<compile_context>
chip_gen: v5e
topology: v5e:2x2
jax: 0.10.0
libtpu: 0.0.40
codegen_flags: <defaults>
</compile_context>

<pallas_src>
import functools

import jax
import jax.numpy as jnp
from jax.experimental import pallas as pl
from jax.experimental.pallas import tpu as pltpu

CLASSES = 9
SMOOTHING = 0.3
CONFIDENCE = 1.0 - SMOOTHING


def _label_smoothing_kernel(pred_ref, tgt_ref, out_ref, *, n_valid, smoothing):
    # pred_ref: (TILE_N, C) in VMEM -- contiguous HBM ingest, batch on sublanes.
    # tgt_ref : (1, TILE_N) i32 in VMEM -- lane-dense targets.
    # out_ref : (1, 128) f32 in VMEM -- per-tile partial loss sum in lane 0, zeros elsewhere.
    x = pred_ref[...].astype(jnp.float32)            # upcast once (bf16 ingest OK)
    t, c = x.shape
    xt = x.T                                         # (C, T) lane-dense; XLU transpose (idle unit)

    confidence = 1.0 - smoothing
    fill = smoothing / (c - 1)

    # log-softmax over the class (sublane) axis: a cheap C-deep sublane reduce.
    m = jnp.max(xt, axis=0, keepdims=True)                           # (1, T)
    shifted = xt - m                                                 # (C, T)
    lse = jnp.log(jnp.sum(jnp.exp(shifted), axis=0, keepdims=True))  # (1, T)

    # No materialized true_dist:
    #   sum_c(-true_dist * logp) = -( fill * sum_c(logp) + (conf - fill) * logp[target] )
    # with sum_c(logp) = sum_c(shifted) - C * lse.
    sum_logp = jnp.sum(shifted, axis=0, keepdims=True) - c * lse     # (1, T)

    cls_idx = jax.lax.broadcasted_iota(jnp.int32, (c, t), 0)         # (C, T)
    tgt = tgt_ref[...]                                               # (1, T)
    shifted_tgt = jnp.sum(jnp.where(cls_idx == tgt, shifted, 0.0),
                          axis=0, keepdims=True)                     # (1, T)
    logp_tgt = shifted_tgt - lse                                     # (1, T)

    per_row = -(fill * sum_logp + (confidence - fill) * logp_tgt)    # (1, T)

    # Mask batch-padding / ragged-tail columns against the *global* N BEFORE the
    # cross-lane reduce so garbage (possibly NaN) rows never touch the partial sum.
    pid = pl.program_id(0)
    col = jax.lax.broadcasted_iota(jnp.int32, (1, t), 1) + pid * t
    masked = jnp.where(col < n_valid, per_row, 0.0)                  # select drops NaN

    partial = jnp.sum(masked, axis=1, keepdims=True)                 # (1, 1) per-tile partial
    lane = jax.lax.broadcasted_iota(jnp.int32, (1, 128), 1)
    out_ref[...] = jnp.where(lane == 0, partial, 0.0)                # lane-dense 128-wide store


def label_smoothing_loss(pred, target, *, smoothing=SMOOTHING, tile_n=8192):
    """pred: (N, C) float32 or bfloat16 (bf16 preferred for bandwidth), target: (N,) int.

    Returns the scalar mean label-smoothing loss (float32).
    """
    n, c = pred.shape

    # Tile choice: big lane-dense batch tiles (amortize ~0.35us/step pipeline overhead),
    # but never larger than the array so every block start is in-bounds.
    if n < 128:
        tile = n                               # single block equal to full batch dim
    else:
        tile = min(tile_n, (n // 128) * 128)   # multiple of 128, <= N; last block may be ragged
    num_tiles = pl.cdiv(n, tile)

    # Free metadata reshape only -- no pad, no transpose, no extra HBM pass over pred.
    tgt2d = target.astype(jnp.int32).reshape(1, n)

    kernel = functools.partial(_label_smoothing_kernel, n_valid=n, smoothing=smoothing)

    partials = pl.pallas_call(
        kernel,
        out_shape=jax.ShapeDtypeStruct((1, 128 * num_tiles), jnp.float32),
        grid_spec=pltpu.PrefetchScalarGridSpec(
            num_scalar_prefetch=0,
            grid=(num_tiles,),
            in_specs=[
                pl.BlockSpec((tile, c), lambda i: (i, 0)),   # contiguous (TILE_N, C) pred ingest
                pl.BlockSpec((1, tile), lambda i: (0, i)),   # (1, TILE_N) targets
            ],
            out_specs=pl.BlockSpec((1, 128), lambda i: (0, i)),  # per-tile partial sum
        ),
        compiler_params=pltpu.CompilerParams(
            dimension_semantics=("parallel",),        # per-tile partials -> grid splits across TCs
            vmem_limit_bytes=32 * 1024 * 1024,        # headroom for lane-padded ingest buffers
        ),
    )(pred, tgt2d)

    # Tiny final reduction in XLA (num_tiles*128 values); divisor is the global N.
    return jnp.sum(partials) / jnp.float32(n)


def _reference(pred, target, smoothing=SMOOTHING):
    n, c = pred.shape
    logp = jax.nn.log_softmax(pred.astype(jnp.float32), axis=-1)
    true_dist = jnp.full_like(logp, smoothing / (c - 1))
    true_dist = true_dist.at[jnp.arange(n), target].set(1.0 - smoothing)
    return jnp.mean(jnp.sum(-true_dist * logp, axis=-1))


if __name__ == "__main__":
    key = jax.random.PRNGKey(0)
    k1, k2, k3, k4 = jax.random.split(key, 4)

    # Small shape matching the module defaults: batch=8, classes=9.
    N = 8
    pred = jax.random.normal(k1, (N, CLASSES), dtype=jnp.float32)
    target = jax.random.randint(k2, (N,), 0, CLASSES, dtype=jnp.int32)

    loss = label_smoothing_loss(pred, target)
    loss = jax.block_until_ready(loss)
    ref = _reference(pred, target)
    assert jnp.allclose(loss, ref, rtol=1e-5, atol=1e-5), (loss, ref)

    # Second check: multi-tile + ragged last block path (N not a multiple of the tile).
    N2 = 300
    pred2 = jax.random.normal(k3, (N2, CLASSES), dtype=jnp.float32)
    target2 = jax.random.randint(k4, (N2,), 0, CLASSES, dtype=jnp.int32)
    loss2 = jax.block_until_ready(label_smoothing_loss(pred2, target2))
    ref2 = _reference(pred2, target2)
    assert jnp.allclose(loss2, ref2, rtol=1e-5, atol=1e-5), (loss2, ref2)

    print("KERNEL_OK")
</pallas_src>

<mosaic_0001>
module attributes {stable_mosaic.version = 11 : i64} {
  func.func @_label_smoothing_kernel(%arg0: i32, %arg1: memref<8x9xf32, #tpu.memory_space<vmem>>, %arg2: memref<1x8xi32, #tpu.memory_space<vmem>>, %arg3: memref<1x128xf32, #tpu.memory_space<vmem>>) attributes {dimension_semantics = [#tpu.dimension_semantics<parallel>], iteration_bounds = array<i64: 1>, scalar_prefetch = 0 : i64, scratch_operands = 0 : i64, tpu.core_type = #tpu.core_type<tc>, window_params = [{transform_indices = @transform_0, window_bounds = array<i64: 8, 9>}, {transform_indices = @transform_1, window_bounds = array<i64: 1, 8>}, {transform_indices = @transform_2, window_bounds = array<i64: 1, 128>}]} {
    %c0 = arith.constant 0 : index
    %c0_0 = arith.constant 0 : index
    %0 = vector.load %arg1[%c0, %c0_0] : memref<8x9xf32, #tpu.memory_space<vmem>>, vector<8x9xf32>
    %1 = tpu.transpose %0, [1, 0] : vector<8x9xf32> -> vector<9x8xf32>
    %cst = arith.constant dense<0xFF800000> : vector<8xf32>
    %2 = vector.multi_reduction <maximumf>, %1, %cst [0] : vector<9x8xf32> to vector<8xf32>
    %3 = vector.shape_cast %2 : vector<8xf32> to vector<1x8xf32>
    %4 = vector.broadcast %3 : vector<1x8xf32> to vector<9x8xf32>
    %5 = arith.subf %1, %4 : vector<9x8xf32>
    %6 = math.exp %5 : vector<9x8xf32>
    %cst_1 = arith.constant dense<0.000000e+00> : vector<8xf32>
    %7 = vector.multi_reduction <add>, %6, %cst_1 [0] : vector<9x8xf32> to vector<8xf32>
    %8 = vector.shape_cast %7 : vector<8xf32> to vector<1x8xf32>
    %9 = math.log %8 : vector<1x8xf32>
    %cst_2 = arith.constant dense<0.000000e+00> : vector<8xf32>
    %10 = vector.multi_reduction <add>, %5, %cst_2 [0] : vector<9x8xf32> to vector<8xf32>
    %11 = vector.shape_cast %10 : vector<8xf32> to vector<1x8xf32>
    %cst_3 = arith.constant 9.000000e+00 : f32
    %12 = vector.broadcast %cst_3 : f32 to vector<1x8xf32>
    %13 = arith.mulf %12, %9 : vector<1x8xf32>
    %14 = arith.subf %11, %13 : vector<1x8xf32>
    %15 = tpu.iota {dimensions = array<i32: 0>} : vector<9x8xi32>
    %c0_4 = arith.constant 0 : index
    %c0_5 = arith.constant 0 : index
    %16 = vector.load %arg2[%c0_4, %c0_5] : memref<1x8xi32, #tpu.memory_space<vmem>>, vector<1x8xi32>
    %17 = vector.broadcast %16 : vector<1x8xi32> to vector<9x8xi32>
    %18 = arith.cmpi eq, %15, %17 : vector<9x8xi32>
    %cst_6 = arith.constant 0.000000e+00 : f32
    %19 = vector.broadcast %cst_6 : f32 to vector<9x8xf32>
    %20 = arith.select %18, %5, %19 : vector<9x8xi1>, vector<9x8xf32>
    %cst_7 = arith.constant dense<0.000000e+00> : vector<8xf32>
    %21 = vector.multi_reduction <add>, %20, %cst_7 [0] : vector<9x8xf32> to vector<8xf32>
    %22 = vector.shape_cast %21 : vector<8xf32> to vector<1x8xf32>
    %23 = arith.subf %22, %9 : vector<1x8xf32>
    %cst_8 = arith.constant 3.750000e-02 : f32
    %24 = vector.broadcast %cst_8 : f32 to vector<1x8xf32>
    %25 = arith.mulf %24, %14 : vector<1x8xf32>
    %cst_9 = arith.constant 6.625000e-01 : f32
    %26 = vector.broadcast %cst_9 : f32 to vector<1x8xf32>
    %27 = arith.mulf %26, %23 : vector<1x8xf32>
    %28 = arith.addf %25, %27 : vector<1x8xf32>
    %cst_10 = arith.constant 0.000000e+00 : f32
    %29 = vector.broadcast %cst_10 : f32 to vector<1x8xf32>
    %30 = arith.subf %29, %28 : vector<1x8xf32>
    %31 = tpu.iota {dimensions = array<i32: 1>} : vector<1x8xi32>
    %c8_i32 = arith.constant 8 : i32
    %32 = arith.muli %arg0, %c8_i32 : i32
    %33 = vector.broadcast %32 : i32 to vector<1x8xi32>
    %34 = arith.addi %31, %33 : vector<1x8xi32>
    %c8_i32_11 = arith.constant 8 : i32
    %35 = vector.broadcast %c8_i32_11 : i32 to vector<1x8xi32>
    %36 = arith.cmpi slt, %34, %35 : vector<1x8xi32>
    %cst_12 = arith.constant 0.000000e+00 : f32
    %37 = vector.broadcast %cst_12 : f32 to vector<1x8xf32>
    %38 = arith.select %36, %30, %37 : vector<1x8xi1>, vector<1x8xf32>
    %cst_13 = arith.constant dense<0.000000e+00> : vector<1xf32>
    %39 = vector.multi_reduction <add>, %38, %cst_13 [1] : vector<1x8xf32> to vector<1xf32>
    %40 = vector.shape_cast %39 : vector<1xf32> to vector<1x1xf32>
    %41 = tpu.iota {dimensions = array<i32: 1>} : vector<1x128xi32>
    %c0_i32 = arith.constant 0 : i32
    %42 = vector.broadcast %c0_i32 : i32 to vector<1x128xi32>
    %43 = arith.cmpi eq, %41, %42 : vector<1x128xi32>
    %cst_14 = arith.constant 0.000000e+00 : f32
    %44 = vector.shape_cast %40 : vector<1x1xf32> to vector<1x1xf32>
    %45 = vector.broadcast %44 : vector<1x1xf32> to vector<1x128xf32>
    %46 = vector.broadcast %cst_14 : f32 to vector<1x128xf32>
    %47 = arith.select %43, %45, %46 : vector<1x128xi1>, vector<1x128xf32>
    %c0_15 = arith.constant 0 : index
    %c0_16 = arith.constant 0 : index
    %48 = vector.load %arg3[%c0_15, %c0_16] : memref<1x128xf32, #tpu.memory_space<vmem>>, vector<1x128xf32>
    tpu.vector_store %arg3[%c0_15, %c0_16], %47 {strides = array<i32>} : memref<1x128xf32, #tpu.memory_space<vmem>>, vector<1x128xf32>,
    return
  }
  func.func @transform_0(%arg0: i32) -> (i32, i32) {
    %c0_i32 = arith.constant 0 : i32
    %c0_i32_0 = arith.constant 0 : i32
    return %arg0, %c0_i32 : i32, i32
  }
  func.func @transform_1(%arg0: i32) -> (i32, i32) {
    %c0_i32 = arith.constant 0 : i32
    %c0_i32_0 = arith.constant 0 : i32
    return %c0_i32, %arg0 : i32, i32
  }
  func.func @transform_2(%arg0: i32) -> (i32, i32) {
    %c0_i32 = arith.constant 0 : i32
    %c0_i32_0 = arith.constant 0 : i32
    return %c0_i32, %arg0 : i32, i32
  }
}

</mosaic_0001>

<bundles_post_ra>
// kernel: tpu_custom_call.1
= control target key start
LH: loop header
LB: loop body
LE: loop exit
PB: predicated region body
PF: predicated region fallthrough
CT: control target
= control target key end

     0   :  { %7 = vsyncpa [#allocation3], 0  ;;  %s291_s0 = inlined_call_operand.hbm [shape: f32[8,9], index: 0, kind: input, shape index: {}]   ;;  %s292_s1 = inlined_call_operand.hbm [shape: s32[1,8], index: 1, kind: input, shape index: {}]   ;;  %s293_s2 = inlined_call_operand.hbm [shape: f32[1,128], index: 2, kind: output, shape index: {}]  }
   0x1   :  { %8 = vsyncpa [#allocation6], 0 }
   0x2   :  { %9 = vsyncpa [#allocation4], 0  ;;  %s15_s11 = sshll.u32 %s291_s0, 4  ;;  %s255_s12 = smov [#allocation2]   ;;  %s16_s11 = int_to_ptr.hbm [resolvable:$true] %s15_s11 }
   0x3   :  { %s17_s13 = sshll.u32 %s255_s12, 4  ;;  %s26_s16 = sshll.u32 %s292_s1, 4  ;;  %s18_s13 = int_to_ptr.vmem [resolvable:$true] %s17_s13  ;;  %s27_s16 = int_to_ptr.hbm [resolvable:$true] %s26_s16 }
   0x4   :  { %20 = dma.hbm_to_vmem [thread:$0]  %s16_s11, 128, %s18_s13, [#allocation3]  }
   0x5   :  { %s256_s17 = smov [#allocation5]  }
   0x6   :  { %s28_s18 = sshll.u32 %s256_s17, 4  ;;  %s29_s18 = int_to_ptr.vmem [resolvable:$true] %s28_s18 }
   0x7   :  { %31 = dma.hbm_to_vmem [thread:$0]  %s27_s16, 16, %s29_s18, [#allocation6]  }
   0x8   :  { %249 = dma.done.wait [#allocation3], 128  }
   0x9   :  { %250 = vsyncadd [#allocation3], 4294967168 }
   0xa   :  { %251 = dma.done.wait [#allocation6], 16  }
   0xb   :  { %252 = vsyncadd [#allocation6], 4294967280  ;;  %v40_v0 = vld [vmem:[#allocation2] sm:$0xff]  ;;  %vm73_vm0 = vcmask 64512   ;;  %vm75_vm1 = vcmask 57344   ;;  %v112_v7 = vlaneseq  ;;  %s257_s0 = smov [#allocation7]  }
   0xc   :  { %41 = vxpose.xlu0.b32.start.end [1/1] (short) (narrow) %v40_v0, 16  ;;  %v170_v14 = vld [vmem:[#allocation5] ss:$0 sm:$0xff]  ;;  %s153_s1 = sshll.u32 %s257_s0, 4  ;;  %s155_s21 = sshll.u32 %s293_s2, 4  ;;  %s154_s1 = int_to_ptr.vmem [resolvable:$true] %s153_s1  ;;  %s156_s21 = int_to_ptr.hbm [resolvable:$true] %s155_s21 }
   0xd   :  { %v113_v10 = vshrl.u32 %v112_v7, 7  ;;  %v136_v56 = vand.u32 127, %v112_v7 }
   0xf   :  { %v114_v13 = vadd.s32 8, %v113_v10  ;;  %vm117_vm2 = vcmp.eq.s32.totalorder %v113_v10, %v170_v14  ;;  %vm140_vm4 = vcmp.lt.s32.totalorder %v136_v56, 8  ;;  %vm145_vm5 = vcmp.eq.s32.totalorder %v136_v56, 0 }
  0x11   :  { %vm118_vm3 = vcmp.eq.s32.totalorder %v114_v13, %v170_v14 }
  0xb0   :  { %v57_v1 = vpop.trf.xlu0 }
  0xb1   :  { %v74_v3 = vsel %vm73_vm0, %v57_v1, -inf }
  0xb8   :  { %v58_v2 = vpop.trf.xlu0 }
  0xb9   :  { %v76_v4 = vsel %vm75_vm1, %v58_v2, -inf }
  0xba   :  { %v77_v5 = vmax.f32 %v74_v3, %v76_v4 }
  0xbc   :  { %v78_v6 = vrot.slane %v77_v5, 4 }
  0xbe   :  { %v79_v8 = vmax.f32 %v77_v5, %v78_v6 }
  0xc0   :  { %v80_v9 = vrot.slane %v79_v8, 2 }
  0xc2   :  { %v81_v11 = vmax.f32 %v79_v8, %v80_v9 }
  0xc4   :  { %v82_v12 = vrot.slane %v81_v11, 1 }
  0xc6   :  { %v83_v15 = vmax.f32 %v81_v11, %v82_v12 }
  0xc8   :  { %v84_v16 = vsub.f32 %v57_v1, %v83_v15  ;;  %v85_v17 = vsub.f32 %v58_v2, %v83_v15 }
  0xca   :  { %v86_v18 = vmul.f32 1.442695, %v84_v16  ;;  %v88_v19 = vmul.f32 1.442695, %v85_v17  ;;  %v119_v20 = vsel %vm117_vm2, %v84_v16, 0.0  ;;  %v120_v21 = vsel %vm118_vm3, %v85_v17, 0.0 }
  0xcb   :  { %v121_v22 = vsel %vm73_vm0, %v119_v20, 0.0  ;;  %v122_v23 = vsel %vm75_vm1, %v120_v21, 0.0  ;;  %v101_v24 = vsel %vm73_vm0, %v84_v16, 0.0  ;;  %v102_v25 = vsel %vm75_vm1, %v85_v17, 0.0 }
  0xcc   :  { %171 = vpow2.f32 %v86_v18  ;;  %v123_v27 = vadd.f32 %v122_v23, %v121_v22  ;;  %v103_v31 = vadd.f32 %v102_v25, %v101_v24 }
  0xcd   :  { %173 = vpow2.f32 %v88_v19 }
  0xce   :  { %v124_v33 = vrot.slane %v123_v27, 4  ;;  %v104_v35 = vrot.slane %v103_v31, 4 }
  0xd0   :  { %v125_v37 = vadd.f32 %v124_v33, %v123_v27  ;;  %v105_v39 = vadd.f32 %v104_v35, %v103_v31 }
  0xd2   :  { %v172_v26 = vpop.eup %171  ;;  %v126_v41 = vrot.slane %v125_v37, 2  ;;  %v106_v43 = vrot.slane %v105_v39, 2 }
  0xd3   :  { %v174_v28 = vpop.eup %173  ;;  %v90_v29 = vsel %vm73_vm0, %v172_v26, 0.0 }
  0xd4   :  { %v91_v30 = vsel %vm75_vm1, %v174_v28, 0.0  ;;  %v127_v45 = vadd.f32 %v126_v41, %v125_v37  ;;  %v107_v46 = vadd.f32 %v106_v43, %v105_v39 }
  0xd5   :  { %v92_v32 = vadd.f32 %v91_v30, %v90_v29 }
  0xd6   :  { %v128_v47 = vrot.slane %v127_v45, 1  ;;  %v108_v48 = vrot.slane %v107_v46, 1 }
  0xd7   :  { %v93_v34 = vrot.slane %v92_v32, 4 }
  0xd8   :  { %v129_v51 = vadd.f32 %v128_v47, %v127_v45  ;;  %v109_v52 = vadd.f32 %v108_v48, %v107_v46 }
  0xd9   :  { %v94_v36 = vadd.f32 %v93_v34, %v92_v32 }
  0xdb   :  { %v95_v38 = vrot.slane %v94_v36, 2 }
  0xdd   :  { %v96_v40 = vadd.f32 %v95_v38, %v94_v36 }
  0xdf   :  { %v97_v42 = vrot.slane %v96_v40, 1 }
  0xe1   :  { %v98_v44 = vadd.f32 %v97_v42, %v96_v40 }
  0xe3   :  { %175 = vlog2.f32 %v98_v44 }
  0xe9   :  { %v176_v49 = vpop.eup %175 }
  0xea   :  { %v100_v50 = vmul.f32 0.6931472, %v176_v49 }
  0xec   :  { %v110_v53 = vmul.f32 9.0, %v100_v50  ;;  %v130_v54 = vsub.f32 %v129_v51, %v100_v50 }
  0xee   :  { %v111_v55 = vsub.f32 %v109_v52, %v110_v53  ;;  %v132_v58 = vmul.f32 0.6625, %v130_v54 }
  0xf0   :  { %v131_v57 = vmul.f32 0.0375, %v111_v55 }
  0xf2   :  { %v133_v59 = vadd.f32 %v132_v58, %v131_v57 }
  0xf4   :  { %v134_v60 = vsub.f32 0.0, %v133_v59 }
  0xf6   :  { %v141_v61 = vsel %vm140_vm4, %v134_v60, 0.0 }
  0xf7   :  { %v142_v62 = vsel %vm73_vm0, %v141_v61, 0.0 }
  0xf8   :  { %143 = vadd.xlane.f32.xlu0 %v142_v62 }
 0x16b   :  { %v144_v63 = vpop.xlane.xlu0 %143 }
 0x16c   :  { %v146_v0 = vsel %vm145_vm5, %v144_v63, 0.0 }
 0x16d   :  { %147 = vst [vmem:[#allocation7] sm:$0x1] %v146_v0 }
 0x16e   :  { %158 = dma.vmem_to_hbm [thread:$0]  %s154_s1, 16, %s156_s21, [#allocation4]  }
 0x16f   :  { %253 = dma.done.wait [#allocation4], 16  }
 0x170   :  { %254 = vsyncadd [#allocation4], 4294967280 }
 0x171   :  { %163 = vsyncpa [#allocation3], 1 }
 0x172   :  { %164 = vsyncpa [#allocation6], 1 }
 0x173   :  { %165 = vsyncpa [#allocation4], 1 }

</bundles_post_ra>
